<compile_context>
chip_gen: v7x
topology: tpu7x:2x2x1
jax: 0.10.0
libtpu: 0.0.40
codegen_flags: <defaults>
</compile_context>

<pallas_src>
from functools import partial

import jax
import jax.numpy as jnp
from jax.experimental import pallas as pl
from jax.experimental.pallas import tpu as pltpu

IN_DIM = 15
OUT_DIM = 46
LAYERS = (32, 64)          # hidden layer widths (the `layers` ctor arg)
DROPOUT = (0.1, 0.2)       # the `dropout_rates` ctor arg (identity at eval)
BN_EPS = 1e-5

K0_PAD = 16                # input features padded only to a sublane multiple
H_PAD = 128                # hidden widths padded to full lane width (MXU tiles)
OUT_PAD = 64               # output padded to 64 lanes (vs 128): 2x less writeback
TM_CAP = 2048              # max batch rows per grid step


def _round_up(n, m):
    return ((n + m - 1) // m) * m


def _cdiv(a, b):
    return (a + b - 1) // b


# --------------------------------------------------------------------------- #
# Kernel
# --------------------------------------------------------------------------- #
def polytope_kernel(x_ref, *refs):
    """refs = [w, b] per layer (hidden layers + output layer) + [o_ref].

    Weights arrive BN-folded and padded: w0 (16,128), w1 (128,128), w2 (128,64);
    biases (1, out_pad).  x tile is (tm, 16); output tile is (tm, 64).
    """
    param_refs = refs[:-1]
    o_ref = refs[-1]
    n_layers = len(param_refs) // 2

    h = x_ref[...]
    for li in range(n_layers):
        w, b = param_refs[2 * li], param_refs[2 * li + 1]
        z = jnp.dot(h, w[...], preferred_element_type=jnp.float32) + b[...]
        if li < n_layers - 1:
            # ReLU (Dropout with p>0 is the identity at inference)
            h = jnp.maximum(z, 0.0)
        else:
            # Sigmoid: exp + reciprocal both on the EUP slot (approx vrcp is free).
            o_ref[...] = pl.reciprocal(1.0 + jnp.exp(-z), approx=True)


# --------------------------------------------------------------------------- #
# Wrapper
# --------------------------------------------------------------------------- #
def _choose_tm(B):
    if B <= 512:
        return _round_up(B, 8)                    # one step, no wasted rows
    # >= 2 steps keeps both v7x TensorCores busy; cap rows/step at TM_CAP and
    # derive tm from B so batch padding is at most a few rows, never ~2x.
    n_steps = max(2, _cdiv(B, TM_CAP))
    return _round_up(_cdiv(B, n_steps), 8)


def polytope_forward(x, folded_params, *, tm=None):
    """x: (B, 15) float32 (any B).  folded_params: output of fold_and_pad_params."""
    B = x.shape[0]
    if tm is None:
        tm = _choose_tm(B)
    tm = _round_up(tm, 8)
    B_pad = _round_up(B, tm)

    # Narrow input stream: features padded only 15 -> 16 (zero column; zero rows
    # of w0 make the math identical), batch padded to a tile multiple.
    x = x.astype(jnp.float32)
    if B_pad != B or x.shape[1] != K0_PAD:
        x = jnp.pad(x, ((0, B_pad - B), (0, K0_PAD - x.shape[1])))

    in_specs = [pl.BlockSpec((tm, K0_PAD), lambda i: (i, 0))]
    for p in folded_params:
        # Whole (small) parameter array resident every grid step.
        in_specs.append(pl.BlockSpec(p.shape, lambda i, _n=p.ndim: (0,) * _n))

    # Advisory cost: report the bytes/flops that actually move (padded shapes).
    flops = 2 * B_pad * (K0_PAD * H_PAD + H_PAD * H_PAD + H_PAD * OUT_PAD)
    bytes_accessed = (B_pad * (K0_PAD + OUT_PAD) * 4
                      + sum(int(p.size) * p.dtype.itemsize for p in folded_params))
    cost = pl.CostEstimate(flops=flops,
                           transcendentals=B_pad * OUT_PAD,
                           bytes_accessed=bytes_accessed)

    out = pl.pallas_call(
        polytope_kernel,
        out_shape=jax.ShapeDtypeStruct((B_pad, OUT_PAD), jnp.float32),
        grid=(B_pad // tm,),
        in_specs=in_specs,
        out_specs=pl.BlockSpec((tm, OUT_PAD), lambda i: (i, 0)),
        compiler_params=pltpu.CompilerParams(
            dimension_semantics=("parallel",)),
        cost_estimate=cost,
    )(x, *folded_params)

    # Drop batch padding and the 18 padded output lanes (46 real columns).
    return out[:B, :OUT_DIM]


# --------------------------------------------------------------------------- #
# Parameter prep: BN folding + padding (one-time, at model load)
# --------------------------------------------------------------------------- #
def _as_row(v):
    return v.reshape(1, -1)


def fold_and_pad_params(params):
    """Fold BatchNorm into the preceding Linear and pad to kernel shapes."""
    folded = []
    idx = 0
    for _ in range(len(LAYERS)):
        w, b, g, beta, mean, var = params[idx:idx + 6]
        idx += 6
        b, g, beta, mean, var = map(_as_row, (b, g, beta, mean, var))
        scale = g / jnp.sqrt(var + BN_EPS)         # (1, out)
        w_f = w * scale                             # (in, out)
        b_f = (b - mean) * scale + beta             # (1, out)
        folded.append((w_f, b_f))
    w_out, b_out = params[idx], params[idx + 1]
    folded.append((w_out, _as_row(b_out)))

    pad_in = (K0_PAD, H_PAD, H_PAD)
    pad_out = (H_PAD, H_PAD, OUT_PAD)
    padded = []
    for (w_f, b_f), pi, po in zip(folded, pad_in, pad_out):
        w_p = jnp.pad(w_f.astype(jnp.float32),
                      ((0, pi - w_f.shape[0]), (0, po - w_f.shape[1])))
        b_p = jnp.pad(b_f.astype(jnp.float32), ((0, 0), (0, po - b_f.shape[1])))
        padded += [w_p, b_p]
    return padded


# --------------------------------------------------------------------------- #
# Synthetic parameters + plain-JAX reference (eval-mode semantics)
# --------------------------------------------------------------------------- #
def make_params(key):
    """Deterministic synthetic parameters matching PolytopeModel's shapes."""
    params = []
    in_dim = IN_DIM
    for li, neurons in enumerate(LAYERS):
        k = jax.random.fold_in(key, li)
        kw, kb, kg, kbe, km, kv = jax.random.split(k, 6)
        bound = 1.0 / jnp.sqrt(in_dim)
        w = jax.random.uniform(kw, (in_dim, neurons), jnp.float32, -bound, bound)
        b = jax.random.uniform(kb, (1, neurons), jnp.float32, -bound, bound)
        gamma = 1.0 + 0.1 * jax.random.normal(kg, (1, neurons), jnp.float32)
        beta = 0.1 * jax.random.normal(kbe, (1, neurons), jnp.float32)
        rmean = 0.1 * jax.random.normal(km, (1, neurons), jnp.float32)
        rvar = 1.0 + 0.1 * jax.random.uniform(kv, (1, neurons), jnp.float32)
        params += [w, b, gamma, beta, rmean, rvar]
        in_dim = neurons
    k = jax.random.fold_in(key, 1000)
    kw, kb = jax.random.split(k)
    bound = 1.0 / jnp.sqrt(in_dim)
    w_out = jax.random.uniform(kw, (in_dim, OUT_DIM), jnp.float32, -bound, bound)
    b_out = jax.random.uniform(kb, (1, OUT_DIM), jnp.float32, -bound, bound)
    params += [w_out, b_out]
    return params


def reference_forward(x, params):
    """Plain-JAX reference of the same eval-mode forward (un-folded params)."""
    h = x
    idx = 0
    for _ in range(len(LAYERS)):
        w, b, g, beta, mean, var = params[idx:idx + 6]
        idx += 6
        z = h @ w + b
        z = (z - mean) * (g / jnp.sqrt(var + BN_EPS)) + beta
        h = jnp.maximum(z, 0.0)
    w_out, b_out = params[idx], params[idx + 1]
    return jax.nn.sigmoid(h @ w_out + b_out)


if __name__ == "__main__":
    key = jax.random.PRNGKey(0)
    kx, kp = jax.random.split(key)

    params = make_params(kp)
    folded = fold_and_pad_params(params)

    # B=64: single exact tile.  B=203: exercises the batch-padding path.
    for B in (64, 203):
        x = jax.random.normal(jax.random.fold_in(kx, B), (B, IN_DIM), jnp.float32)
        out = jax.block_until_ready(polytope_forward(x, folded))
        ref = reference_forward(x, params)
        assert out.shape == (B, OUT_DIM)
        # approx=True reciprocal in the sigmoid -> tolerance loosened vs 1e-5.
        assert jnp.allclose(out, ref, rtol=2e-3, atol=2e-3), "mismatch vs reference"

    print("KERNEL_OK")
</pallas_src>

<mosaic_0001>
module attributes {stable_mosaic.version = 11 : i64} {
  func.func @polytope_kernel(%arg0: i32, %arg1: memref<64x16xf32, #tpu.memory_space<vmem>>, %arg2: memref<16x128xf32, #tpu.memory_space<vmem>>, %arg3: memref<1x128xf32, #tpu.memory_space<vmem>>, %arg4: memref<128x128xf32, #tpu.memory_space<vmem>>, %arg5: memref<1x128xf32, #tpu.memory_space<vmem>>, %arg6: memref<128x64xf32, #tpu.memory_space<vmem>>, %arg7: memref<1x64xf32, #tpu.memory_space<vmem>>, %arg8: memref<64x64xf32, #tpu.memory_space<vmem>>) attributes {dimension_semantics = [#tpu.dimension_semantics<parallel>], iteration_bounds = array<i64: 1>, scalar_prefetch = 0 : i64, scratch_operands = 0 : i64, tpu.core_type = #tpu.core_type<tc>, window_params = [{transform_indices = @transform_0, window_bounds = array<i64: 64, 16>}, {pipeline_mode = #tpu.pipeline_mode<synchronous>, transform_indices = @transform_1, window_bounds = array<i64: 16, 128>}, {pipeline_mode = #tpu.pipeline_mode<synchronous>, transform_indices = @transform_2, window_bounds = array<i64: 1, 128>}, {pipeline_mode = #tpu.pipeline_mode<synchronous>, transform_indices = @transform_3, window_bounds = array<i64: 128, 128>}, {pipeline_mode = #tpu.pipeline_mode<synchronous>, transform_indices = @transform_4, window_bounds = array<i64: 1, 128>}, {pipeline_mode = #tpu.pipeline_mode<synchronous>, transform_indices = @transform_5, window_bounds = array<i64: 128, 64>}, {pipeline_mode = #tpu.pipeline_mode<synchronous>, transform_indices = @transform_6, window_bounds = array<i64: 1, 64>}, {transform_indices = @transform_7, window_bounds = array<i64: 64, 64>}]} {
    %c0 = arith.constant 0 : index
    %c0_0 = arith.constant 0 : index
    %0 = vector.load %arg1[%c0, %c0_0] : memref<64x16xf32, #tpu.memory_space<vmem>>, vector<64x16xf32>
    %c0_1 = arith.constant 0 : index
    %c0_2 = arith.constant 0 : index
    %1 = vector.load %arg2[%c0_1, %c0_2] : memref<16x128xf32, #tpu.memory_space<vmem>>, vector<16x128xf32>
    %cst = arith.constant dense<0.000000e+00> : vector<64x128xf32>
    %2 = tpu.matmul %0, %1, %cst {dimension_numbers = #tpu.dot_dimension_numbers<[1], [0], [0], [1], [0, 0, 1, 1], [], []>} : vector<64x16xf32>, vector<16x128xf32>, vector<64x128xf32> -> vector<64x128xf32>
    %c0_3 = arith.constant 0 : index
    %c0_4 = arith.constant 0 : index
    %3 = vector.load %arg3[%c0_3, %c0_4] : memref<1x128xf32, #tpu.memory_space<vmem>>, vector<1x128xf32>
    %4 = vector.broadcast %3 : vector<1x128xf32> to vector<64x128xf32>
    %5 = arith.addf %2, %4 : vector<64x128xf32>
    %cst_5 = arith.constant 0.000000e+00 : f32
    %6 = vector.broadcast %cst_5 : f32 to vector<64x128xf32>
    %7 = arith.maximumf %5, %6 : vector<64x128xf32>
    %c0_6 = arith.constant 0 : index
    %c0_7 = arith.constant 0 : index
    %8 = vector.load %arg4[%c0_6, %c0_7] : memref<128x128xf32, #tpu.memory_space<vmem>>, vector<128x128xf32>
    %cst_8 = arith.constant dense<0.000000e+00> : vector<64x128xf32>
    %9 = tpu.matmul %7, %8, %cst_8 {dimension_numbers = #tpu.dot_dimension_numbers<[1], [0], [0], [1], [0, 0, 1, 1], [], []>} : vector<64x128xf32>, vector<128x128xf32>, vector<64x128xf32> -> vector<64x128xf32>
    %c0_9 = arith.constant 0 : index
    %c0_10 = arith.constant 0 : index
    %10 = vector.load %arg5[%c0_9, %c0_10] : memref<1x128xf32, #tpu.memory_space<vmem>>, vector<1x128xf32>
    %11 = vector.broadcast %10 : vector<1x128xf32> to vector<64x128xf32>
    %12 = arith.addf %9, %11 : vector<64x128xf32>
    %cst_11 = arith.constant 0.000000e+00 : f32
    %13 = vector.broadcast %cst_11 : f32 to vector<64x128xf32>
    %14 = arith.maximumf %12, %13 : vector<64x128xf32>
    %c0_12 = arith.constant 0 : index
    %c0_13 = arith.constant 0 : index
    %15 = vector.load %arg6[%c0_12, %c0_13] : memref<128x64xf32, #tpu.memory_space<vmem>>, vector<128x64xf32>
    %cst_14 = arith.constant dense<0.000000e+00> : vector<64x64xf32>
    %16 = tpu.matmul %14, %15, %cst_14 {dimension_numbers = #tpu.dot_dimension_numbers<[1], [0], [0], [1], [0, 0, 1, 1], [], []>} : vector<64x128xf32>, vector<128x64xf32>, vector<64x64xf32> -> vector<64x64xf32>
    %c0_15 = arith.constant 0 : index
    %c0_16 = arith.constant 0 : index
    %17 = vector.load %arg7[%c0_15, %c0_16] : memref<1x64xf32, #tpu.memory_space<vmem>>, vector<1x64xf32>
    %18 = vector.broadcast %17 : vector<1x64xf32> to vector<64x64xf32>
    %19 = arith.addf %16, %18 : vector<64x64xf32>
    %cst_17 = arith.constant 0.000000e+00 : f32
    %20 = vector.broadcast %cst_17 : f32 to vector<64x64xf32>
    %21 = arith.subf %20, %19 : vector<64x64xf32>
    %22 = math.exp %21 : vector<64x64xf32>
    %cst_18 = arith.constant 1.000000e+00 : f32
    %23 = vector.broadcast %cst_18 : f32 to vector<64x64xf32>
    %24 = arith.addf %23, %22 : vector<64x64xf32>
    %25 = tpu.reciprocal %24 {approx = true} : vector<64x64xf32> -> vector<64x64xf32>
    %c0_19 = arith.constant 0 : index
    %c0_20 = arith.constant 0 : index
    %26 = vector.load %arg8[%c0_19, %c0_20] : memref<64x64xf32, #tpu.memory_space<vmem>>, vector<64x64xf32>
    tpu.vector_store %arg8[%c0_19, %c0_20], %25 {strides = array<i32>} : memref<64x64xf32, #tpu.memory_space<vmem>>, vector<64x64xf32>,
    return
  }
  func.func @transform_0(%arg0: i32) -> (i32, i32) {
    %c0_i32 = arith.constant 0 : i32
    %c0_i32_0 = arith.constant 0 : i32
    return %arg0, %c0_i32 : i32, i32
  }
  func.func @transform_1(%arg0: i32) -> (i32, i32) {
    %c0_i32 = arith.constant 0 : i32
    %c0_i32_0 = arith.constant 0 : i32
    %c0_i32_1 = arith.constant 0 : i32
    return %c0_i32, %c0_i32_0 : i32, i32
  }
  func.func @transform_2(%arg0: i32) -> (i32, i32) {
    %c0_i32 = arith.constant 0 : i32
    %c0_i32_0 = arith.constant 0 : i32
    %c0_i32_1 = arith.constant 0 : i32
    return %c0_i32, %c0_i32_0 : i32, i32
  }
  func.func @transform_3(%arg0: i32) -> (i32, i32) {
    %c0_i32 = arith.constant 0 : i32
    %c0_i32_0 = arith.constant 0 : i32
    %c0_i32_1 = arith.constant 0 : i32
    return %c0_i32, %c0_i32_0 : i32, i32
  }
  func.func @transform_4(%arg0: i32) -> (i32, i32) {
    %c0_i32 = arith.constant 0 : i32
    %c0_i32_0 = arith.constant 0 : i32
    %c0_i32_1 = arith.constant 0 : i32
    return %c0_i32, %c0_i32_0 : i32, i32
  }
  func.func @transform_5(%arg0: i32) -> (i32, i32) {
    %c0_i32 = arith.constant 0 : i32
    %c0_i32_0 = arith.constant 0 : i32
    %c0_i32_1 = arith.constant 0 : i32
    return %c0_i32, %c0_i32_0 : i32, i32
  }
  func.func @transform_6(%arg0: i32) -> (i32, i32) {
    %c0_i32 = arith.constant 0 : i32
    %c0_i32_0 = arith.constant 0 : i32
    %c0_i32_1 = arith.constant 0 : i32
    return %c0_i32, %c0_i32_0 : i32, i32
  }
  func.func @transform_7(%arg0: i32) -> (i32, i32) {
    %c0_i32 = arith.constant 0 : i32
    %c0_i32_0 = arith.constant 0 : i32
    return %arg0, %c0_i32 : i32, i32
  }
}

</mosaic_0001>

<bundles_post_ra>
// kernel: tpu_custom_call.1
= control target key start
LH: loop header
LB: loop body
LE: loop exit
PB: predicated region body
PF: predicated region fallthrough
CT: control target
= control target key end

     0   :  { %vm44_vm0 = vcmask 130048   ;;  %s1017_s0 = inlined_call_operand.vmem [shape: f32[64,16], index: 0, kind: input, shape index: {}]   ;;  %s1018_s1 = inlined_call_operand.vmem [shape: f32[16,128], index: 1, kind: input, shape index: {}]   ;;  %s1019_s2 = inlined_call_operand.vmem [shape: f32[1,128], index: 2, kind: input, shape index: {}]   ;;  %s1020_s3 = inlined_call_operand.vmem [shape: f32[128,128], index: 3, kind: input, shape index: {}]   ;;  %s1021_s4 = inlined_call_operand.vmem [shape: f32[1,128], index: 4, kind: input, shape index: {}]   ;;  %s1022_s5 = inlined_call_operand.vmem [shape: f32[128,64], index: 5, kind: input, shape index: {}]   ;;  %s1023_s6 = inlined_call_operand.vmem [shape: f32[1,64], index: 6, kind: input, shape index: {}]   ;;  %s1024_s7 = inlined_call_operand.hbm [shape: f32[64,64], index: 7, kind: output, shape index: {}]  }
   0x1   :  { %v35_v0 = vld [vmem:[%s1018_s1] sm:$0xff]  ;;  %v36_v1 = vld [vmem:[%s1018_s1 + $0x8] sm:$0xff]  ;;  %v184_v8 = vld [vmem:[%s1020_s3 + $0x10] sm:$0xff] }
   0x2   :  { %v27_v2 = vld [vmem:[%s1017_s0] sm:$0xff]  ;;  %v684_v3 = vpack.c.bf16 %v36_v1, %v35_v0  ;;  %v183_v5 = vld [vmem:[%s1020_s3 + $0x8] sm:$0xff]  ;;  %v185_v9 = vld [vmem:[%s1020_s3 + $0x18] sm:$0xff] }
   0x3   :  { %584 = vmatprep.mubr.msk.f32.mxu0 %vm44_vm0, %v27_v2  ;;  %v182_v4 = vld [vmem:[%s1020_s3] sm:$0xff]  ;;  %v28_v6 = vld [vmem:[%s1017_s0 + $0x8] sm:$0xff]  ;;  %v29_v10 = vld [vmem:[%s1017_s0 + $0x10] sm:$0xff]  ;;  %v692_v11 = vpack.c.bf16 %v185_v9, %v184_v8 }
   0x4   :  { %685 = vmatprep.subr.bf16.mxu0 %v684_v3  ;;  %v688_v7 = vpack.c.bf16 %v183_v5, %v182_v4  ;;  %v186_v12 = vld [vmem:[%s1020_s3 + $0x20] sm:$0xff]  ;;  %v187_v13 = vld [vmem:[%s1020_s3 + $0x28] sm:$0xff]  ;;  %v30_v14 = vld [vmem:[%s1017_s0 + $0x18] sm:$0xff] }
   0x5   :  { %687 = vmatpush3.bf16.msra.mxu0 %v684_v3  ;;  %v696_v15 = vpack.c.bf16 %v187_v13, %v186_v12 }
   0x6   :  { %689 = vmatprep.subr.bf16.mxu1 %v688_v7 }
   0x7   :  { %691 = vmatpush3.bf16.msra.mxu1 %v688_v7 }
   0x8   :  { %585 = vmatmul.mubr.msk.f32.vlgmr.msra.gmra.mrb[0].mxu0 %vm44_vm0, %v28_v6  ;;  %693 = vmatprep.subr.bf16.mxu1 %v692_v11 }
   0x9   :  { %587 = vmatprep.mubr.msk.f32.mxu0 %vm44_vm0, %v29_v10 }
   0xa   :  { %12 = vsyncpa [#allocation3], 0  ;;  %v31_v16 = vld [vmem:[%s1017_s0 + $0x20] sm:$0xff]  ;;  %v188_v17 = vld [vmem:[%s1020_s3 + $0x30] sm:$0xff]  ;;  %vm486_vm1 = vcmask 523264  }
   0xb   :  { %v189_v18 = vld [vmem:[%s1020_s3 + $0x38] sm:$0xff]  ;;  %695 = vmatpush3.bf16.msra.mxu1 %v692_v11  ;;  %v32_v19 = vld [vmem:[%s1017_s0 + $0x28] sm:$0xff]  ;;  %v33_v21 = vld [vmem:[%s1017_s0 + $0x30] sm:$0xff] }
   0xc   :  { %588 = vmatmul.mubr.msk.f32.gmra.mrb[2].mxu0 %vm44_vm0, %v30_v14  ;;  %697 = vmatprep.subr.bf16.mxu1 %v696_v15  ;;  %v700_v20 = vpack.c.bf16 %v189_v18, %v188_v17  ;;  %v190_v22 = vld [vmem:[%s1020_s3 + $0x40] sm:$0xff]  ;;  %v191_v23 = vld [vmem:[%s1020_s3 + $0x48] sm:$0xff]  ;;  %v34_v24 = vld [vmem:[%s1017_s0 + $0x38] sm:$0xff] }
   0xd   :  { %590 = vmatprep.mubr.msk.f32.mxu0 %vm44_vm0, %v31_v16  ;;  %v704_v25 = vpack.c.bf16 %v191_v23, %v190_v22  ;;  %v192_v26 = vld [vmem:[%s1020_s3 + $0x50] sm:$0xff]  ;;  %v193_v27 = vld [vmem:[%s1020_s3 + $0x58] sm:$0xff]  ;;  %v194_v29 = vld [vmem:[%s1020_s3 + $0x60] sm:$0xff] }
   0xe   :  { %v708_v28 = vpack.c.bf16 %v193_v27, %v192_v26  ;;  %v195_v30 = vld [vmem:[%s1020_s3 + $0x68] sm:$0xff]  ;;  %v196_v32 = vld [vmem:[%s1020_s3 + $0x70] sm:$0xff]  ;;  %v197_v33 = vld [vmem:[%s1020_s3 + $0x78] sm:$0xff] }
   0xf   :  { %699 = vmatpush3.bf16.msra.mxu1 %v696_v15  ;;  %v712_v31 = vpack.c.bf16 %v195_v30, %v194_v29  ;;  %v716_v34 = vpack.c.bf16 %v197_v33, %v196_v32  ;;  %v318_v35 = vld [vmem:[%s1022_s5] sm:$0xff]  ;;  %v319_v36 = vld [vmem:[%s1022_s5 + $0x8] sm:$0xff]  ;;  %v320_v37 = vld [vmem:[%s1022_s5 + $0x10] sm:$0xff] }
  0x10   :  { %591 = vmatmul.mubr.msk.f32.gmra.mrb[4].mxu0 %vm44_vm0, %v32_v19  ;;  %701 = vmatprep.subr.bf16.mxu1 %v700_v20  ;;  %v720_v38 = vpack.c.bf16 %v319_v36, %v318_v35  ;;  %v321_v39 = vld [vmem:[%s1022_s5 + $0x18] sm:$0xff]  ;;  %v322_v41 = vld [vmem:[%s1022_s5 + $0x20] sm:$0xff]  ;;  %v323_v42 = vld [vmem:[%s1022_s5 + $0x28] sm:$0xff] }
  0x11   :  { %593 = vmatprep.mubr.msk.f32.mxu0 %vm44_vm0, %v33_v21  ;;  %v724_v40 = vpack.c.bf16 %v321_v39, %v320_v37  ;;  %v728_v43 = vpack.c.bf16 %v323_v42, %v322_v41  ;;  %v324_v44 = vld [vmem:[%s1022_s5 + $0x30] sm:$0xff]  ;;  %v325_v45 = vld [vmem:[%s1022_s5 + $0x38] sm:$0xff]  ;;  %v326_v47 = vld [vmem:[%s1022_s5 + $0x40] sm:$0xff] }
  0x12   :  { %721 = vmatprep.subr.bf16.mxu0 %v720_v38  ;;  %v732_v46 = vpack.c.bf16 %v325_v45, %v324_v44  ;;  %v327_v48 = vld [vmem:[%s1022_s5 + $0x48] sm:$0xff]  ;;  %v328_v50 = vld [vmem:[%s1022_s5 + $0x50] sm:$0xff]  ;;  %v329_v51 = vld [vmem:[%s1022_s5 + $0x58] sm:$0xff] }
  0x13   :  { %703 = vmatpush3.bf16.msra.mxu1 %v700_v20  ;;  %723 = vmatpush3.bf16.msra.mxu0 %v720_v38  ;;  %v736_v49 = vpack.c.bf16 %v327_v48, %v326_v47  ;;  %v740_v52 = vpack.c.bf16 %v329_v51, %v328_v50  ;;  %v330_v53 = vld [vmem:[%s1022_s5 + $0x60] sm:$0xff]  ;;  %v331_v54 = vld [vmem:[%s1022_s5 + $0x68] sm:$0xff]  ;;  %v332_v17 = vld [vmem:[%s1022_s5 + $0x70] sm:$0xff] }
  0x14   :  { %594 = vmatmul.mubr.msk.f32.gmra.mrb[6].mxu0 %vm44_vm0, %v34_v24  ;;  %705 = vmatprep.subr.bf16.mxu1 %v704_v25  ;;  %v744_v55 = vpack.c.bf16 %v331_v54, %v330_v53  ;;  %v511_v56 = vld [vmem:[%s1019_s2] ss:$0 sm:$0xff]  ;;  %v333_v18 = vld [vmem:[%s1022_s5 + $0x78] sm:$0xff] }
  0x15   :  { %725 = vmatprep.subr.bf16.mxu0 %v724_v40  ;;  %v748_v19 = vpack.c.bf16 %v333_v18, %v332_v17  ;;  %v520_v20 = vld [vmem:[%s1021_s4] ss:$0 sm:$0xff] }
  0x16   :  { %v521_v45 = vld [vmem:[%s1023_s6] ss:$0 sm:$0xff]  ;;  %s811_s6 = smov [#allocation2]  }
  0x17   :  { %707 = vmatpush3.bf16.msra.mxu1 %v704_v25  ;;  %727 = vmatpush3.bf16.msra.mxu0 %v724_v40  ;;  %s500_s1 = sshll.u32 %s811_s6, 4  ;;  %s501_s1 = int_to_ptr.vmem [resolvable:$true] %s500_s1 }
  0x18   :  { %709 = vmatprep.subr.bf16.mxu1 %v708_v28  ;;  %729 = vmatprep.subr.bf16.mxu0 %v728_v43  ;;  %s787_s12 = scalar_lea.vmem %s501_s1, 1024  ;;  %p792_p1 = scmp.lt.s32.totalorder %s501_s1, %s501_s1 }
  0x19   :  { %p788_p0 = scmp.ne.s32.totalorder %s501_s1, %s787_s12  ;;  %p793_p2 = scmp.lt.s32.totalorder %s787_s12, %s787_s12 }
  0x1b   :  { %711 = vmatpush3.bf16.msra.mxu1 %v708_v28  ;;  %731 = vmatpush3.bf16.msra.mxu0 %v728_v43  ;;  %p794_p3 = por %p793_p2, %p792_p1 }
  0x1c   :  { %713 = vmatprep.subr.bf16.mxu1 %v712_v31  ;;  %733 = vmatprep.subr.bf16.mxu0 %v732_v46 }
  0x1d   :  { %p795_p4 = pnand %p794_p3, %p788_p0 }
  0x1f   :  { %715 = vmatpush3.bf16.msra.mxu1 %v712_v31  ;;  %735 = vmatpush3.bf16.msra.mxu0 %v732_v46 }
  0x20   :  { %717 = vmatprep.subr.bf16.mxu1 %v716_v34  ;;  %737 = vmatprep.subr.bf16.mxu0 %v736_v49 }
  0x23   :  { %719 = vmatpush3.bf16.msra.mxu1 %v716_v34  ;;  %739 = vmatpush3.bf16.msra.mxu0 %v736_v49 }
  0x24   :  { %741 = vmatprep.subr.bf16.mxu0 %v740_v52 }
  0x27   :  { %743 = vmatpush3.bf16.msra.mxu0 %v740_v52 }
  0x28   :  { %745 = vmatprep.subr.bf16.mxu0 %v744_v55 }
  0x2b   :  { %747 = vmatpush3.bf16.msra.mxu0 %v744_v55 }
  0x2c   :  { %749 = vmatprep.subr.bf16.mxu0 %v748_v19 }
  0x2f   :  { %751 = vmatpush3.bf16.msra.mxu0 %v748_v19 }
  0xdb   :  { %v586_v57 = vpop.f32.mrb[0].mxu0 }
  0xdc   :  { %v141_v58 = vadd.f32 %v586_v57, %v511_v56  ;;  %v135_v59 = vpop.f32.mrb[1].mxu0 }
  0xdd   :  { %v136_v60 = vadd.f32 %v511_v56, %v135_v59 }
  0xde   :  { %v175_v63 = vmax.f32 %v141_v58, 0.0 }
  0xdf   :  { %v589_v61 = vpop.f32.mrb[2].mxu0  ;;  %v174_v62 = vmax.f32 %v136_v60, 0.0 }
  0xe0   :  { %v151_v0 = vadd.f32 %v589_v61, %v511_v56  ;;  %v145_v1 = vpop.f32.mrb[3].mxu0 }
  0xe1   :  { %v146_v2 = vadd.f32 %v511_v56, %v145_v1  ;;  %628 = vmatprep.mubr.f32.mxu1 %v174_v62 }
  0xe2   :  { %629 = vmatmul.mubr.f32.vlgmr.msra.gmra.mrb[0].mxu1 %v175_v63  ;;  %v177_v5 = vmax.f32 %v151_v0, 0.0 }
  0xe3   :  { %v176_v3 = vmax.f32 %v146_v2, 0.0  ;;  %v592_v4 = vpop.f32.mrb[4].mxu0 }
  0xe4   :  { %v161_v6 = vadd.f32 %v592_v4, %v511_v56  ;;  %v155_v7 = vpop.f32.mrb[5].mxu0 }
  0xe5   :  { %v156_v8 = vadd.f32 %v511_v56, %v155_v7  ;;  %631 = vmatprep.mubr.f32.mxu1 %v176_v3 }
  0xe6   :  { %632 = vmatmul.mubr.f32.gmra.mrb[2].mxu1 %v177_v5  ;;  %v179_v11 = vmax.f32 %v161_v6, 0.0 }
  0xe7   :  { %v178_v9 = vmax.f32 %v156_v8, 0.0  ;;  %v595_v10 = vpop.f32.mrb[6].mxu0 }
  0xe8   :  { %v171_v12 = vadd.f32 %v595_v10, %v511_v56  ;;  %v165_v13 = vpop.f32.mrb[7].mxu0 }
  0xe9   :  { %v166_v14 = vadd.f32 %v511_v56, %v165_v13  ;;  %634 = vmatprep.mubr.f32.mxu1 %v178_v9 }
  0xea   :  { %635 = vmatmul.mubr.f32.gmra.mrb[4].mxu1 %v179_v11  ;;  %v181_v16 = vmax.f32 %v171_v12, 0.0 }
  0xeb   :  { %v180_v15 = vmax.f32 %v166_v14, 0.0 }
  0xed   :  { %637 = vmatprep.mubr.f32.mxu1 %v180_v15 }
  0xee   :  { %638 = vmatmul.mubr.f32.gmra.mrb[6].mxu1 %v181_v16 }
 0x1b5   :  { %v630_v21 = vpop.f32.mrb[0].mxu1 }
 0x1b6   :  { %v277_v22 = vadd.f32 %v630_v21, %v520_v20  ;;  %v271_v23 = vpop.f32.mrb[1].mxu1 }
 0x1b7   :  { %v272_v24 = vadd.f32 %v520_v20, %v271_v23 }
 0x1b8   :  { %v311_v27 = vmax.f32 %v277_v22, 0.0 }
 0x1b9   :  { %v310_v25 = vmax.f32 %v272_v24, 0.0  ;;  %v633_v26 = vpop.f32.mrb[2].mxu1 }
 0x1ba   :  { %v287_v28 = vadd.f32 %v633_v26, %v520_v20  ;;  %v281_v29 = vpop.f32.mrb[3].mxu1 }
 0x1bb   :  { %v282_v30 = vadd.f32 %v520_v20, %v281_v29  ;;  %672 = vmatprep.mubr.f32.mxu0 %v310_v25 }
 0x1bc   :  { %673 = vmatmul.mubr.f32.vlgmr.msra.gmra.mrb[8].mxu0 %v311_v27  ;;  %v313_v33 = vmax.f32 %v287_v28, 0.0 }
 0x1bd   :  { %v312_v31 = vmax.f32 %v282_v30, 0.0  ;;  %v636_v32 = vpop.f32.mrb[4].mxu1 }
 0x1be   :  { %v297_v34 = vadd.f32 %v636_v32, %v520_v20  ;;  %v291_v35 = vpop.f32.mrb[5].mxu1 }
 0x1bf   :  { %v292_v36 = vadd.f32 %v520_v20, %v291_v35  ;;  %675 = vmatprep.mubr.f32.mxu0 %v312_v31 }
 0x1c0   :  { %676 = vmatmul.mubr.f32.gmra.mrb[10].mxu0 %v313_v33  ;;  %v315_v39 = vmax.f32 %v297_v34, 0.0 }
 0x1c1   :  { %v314_v37 = vmax.f32 %v292_v36, 0.0  ;;  %v639_v38 = vpop.f32.mrb[6].mxu1 }
 0x1c2   :  { %v307_v40 = vadd.f32 %v639_v38, %v520_v20  ;;  %v301_v41 = vpop.f32.mrb[7].mxu1 }
 0x1c3   :  { %v302_v42 = vadd.f32 %v520_v20, %v301_v41  ;;  %678 = vmatprep.mubr.f32.mxu0 %v314_v37 }
 0x1c4   :  { %679 = vmatmul.mubr.f32.gmra.mrb[12].mxu0 %v315_v39  ;;  %v317_v44 = vmax.f32 %v307_v40, 0.0 }
 0x1c5   :  { %v316_v43 = vmax.f32 %v302_v42, 0.0 }
 0x1c7   :  { %681 = vmatprep.mubr.f32.mxu0 %v316_v43 }
 0x1c8   :  { %682 = vmatmul.mubr.f32.gmra.mrb[14].mxu0 %v317_v44 }
 0x28f   :  { %v674_v46 = vpop.f32.mrb[8].mxu0 }
 0x290   :  { %v413_v47 = vadd.f32 %v674_v46, %v521_v45  ;;  %v407_v48 = vpop.f32.mrb[9].mxu0 }
 0x291   :  { %v408_v49 = vadd.f32 %v521_v45, %v407_v48 }
 0x292   :  { %v447_v50 = vsub.f32 0.0, %v413_v47 }
 0x293   :  { %v446_v51 = vsub.f32 0.0, %v408_v49  ;;  %v677_v52 = vpop.f32.mrb[10].mxu0 }
 0x294   :  { %v456_v53 = vmul.f32 1.442695, %v447_v50  ;;  %v423_v54 = vadd.f32 %v677_v52, %v521_v45  ;;  %v417_v55 = vpop.f32.mrb[11].mxu0 }
 0x295   :  { %v454_v56 = vmul.f32 1.442695, %v446_v51  ;;  %v418_v57 = vadd.f32 %v521_v45, %v417_v55 }
 0x296   :  { %755 = vpow2.f32 %v456_v53  ;;  %v449_v58 = vsub.f32 0.0, %v423_v54 }
 0x297   :  { %757 = vpow2.f32 %v454_v56  ;;  %v448_v59 = vsub.f32 0.0, %v418_v57  ;;  %v680_v60 = vpop.f32.mrb[12].mxu0 }
 0x298   :  { %v460_v61 = vmul.f32 1.442695, %v449_v58  ;;  %v433_v62 = vadd.f32 %v680_v60, %v521_v45  ;;  %v427_v63 = vpop.f32.mrb[13].mxu0 }
 0x299   :  { %v458_v0 = vmul.f32 1.442695, %v448_v59  ;;  %v428_v1 = vadd.f32 %v521_v45, %v427_v63 }
 0x29a   :  { %759 = vpow2.f32 %v460_v61  ;;  %v451_v2 = vsub.f32 0.0, %v433_v62 }
 0x29b   :  { %761 = vpow2.f32 %v458_v0  ;;  %v450_v3 = vsub.f32 0.0, %v428_v1  ;;  %v683_v4 = vpop.f32.mrb[14].mxu0 }
 0x29c   :  { %v464_v5 = vmul.f32 1.442695, %v451_v2  ;;  %v443_v6 = vadd.f32 %v683_v4, %v521_v45  ;;  %v437_v7 = vpop.f32.mrb[15].mxu0 }
 0x29d   :  { %v462_v8 = vmul.f32 1.442695, %v450_v3  ;;  %v438_v9 = vadd.f32 %v521_v45, %v437_v7 }
 0x29e   :  { %763 = vpow2.f32 %v464_v5  ;;  %v453_v10 = vsub.f32 0.0, %v443_v6 }
 0x29f   :  { %765 = vpow2.f32 %v462_v8  ;;  %v452_v11 = vsub.f32 0.0, %v438_v9 }
 0x2a0   :  { %v756_v12 = vpop.eup %755  ;;  %v468_v13 = vmul.f32 1.442695, %v453_v10 }
 0x2a1   :  { %v758_v14 = vpop.eup %757  ;;  %v471_v15 = vadd.f32 1.0, %v756_v12  ;;  %v466_v16 = vmul.f32 1.442695, %v452_v11 }
 0x2a2   :  { %v470_v17 = vadd.f32 1.0, %v758_v14  ;;  %767 = vpow2.f32 %v468_v13 }
 0x2a3   :  { %769 = vrcp.f32 %v471_v15 }
 0x2a4   :  { %v760_v18 = vpop.eup %759  ;;  %771 = vrcp.f32 %v470_v17 }
 0x2a5   :  { %v762_v19 = vpop.eup %761  ;;  %v473_v20 = vadd.f32 1.0, %v760_v18  ;;  %773 = vpow2.f32 %v466_v16 }
 0x2a6   :  { %v472_v21 = vadd.f32 1.0, %v762_v19 }
 0x2a7   :  { %775 = vrcp.f32 %v473_v20 }
 0x2a8   :  { %v764_v22 = vpop.eup %763  ;;  %777 = vrcp.f32 %v472_v21 }
 0x2a9   :  { %v766_v23 = vpop.eup %765  ;;  %v475_v24 = vadd.f32 1.0, %v764_v22 }
 0x2aa   :  { %v474_v25 = vadd.f32 1.0, %v766_v23 }
 0x2ab   :  { %779 = vrcp.f32 %v475_v24 }
 0x2ac   :  { %v768_v26 = vpop.eup %767  ;;  %781 = vrcp.f32 %v474_v25 }
 0x2ad   :  { %v770_v27 = vpop.eup %769  ;;  %v477_v28 = vadd.f32 1.0, %v768_v26 }
 0x2ae   :  { %v772_v29 = vpop.eup %771  ;;  %488 = vst.msk [vmem:[#allocation2 + $0x8] sm:$0xff] %vm486_vm1, %v770_v27 }
 0x2af   :  { %v774_v30 = vpop.eup %773  ;;  %487 = vst.msk [vmem:[#allocation2] sm:$0xff] %vm486_vm1, %v772_v29  ;;  %783 = vrcp.f32 %v477_v28 }
 0x2b0   :  { %v476_v31 = vadd.f32 1.0, %v774_v30 }
 0x2b1   :  { %v776_v32 = vpop.eup %775 }
 0x2b2   :  { %v778_v33 = vpop.eup %777  ;;  %490 = vst.msk [vmem:[#allocation2 + $0x18] sm:$0xff] %vm486_vm1, %v776_v32  ;;  %785 = vrcp.f32 %v476_v31 }
 0x2b3   :  { %489 = vst.msk [vmem:[#allocation2 + $0x10] sm:$0xff] %vm486_vm1, %v778_v33 }
 0x2b5   :  { %v780_v34 = vpop.eup %779 }
 0x2b6   :  { %v782_v35 = vpop.eup %781  ;;  %492 = vst.msk [vmem:[#allocation2 + $0x28] sm:$0xff] %vm486_vm1, %v780_v34 }
 0x2b7   :  { %491 = vst.msk [vmem:[#allocation2 + $0x20] sm:$0xff] %vm486_vm1, %v782_v35 }
 0x2b9   :  { %v784_v36 = vpop.eup %783 }
 0x2ba   :  { %494 = vst.msk [vmem:[#allocation2 + $0x38] sm:$0xff] %vm486_vm1, %v784_v36 }
 0x2bc   :  { %v786_v37 = vpop.eup %785 }
 0x2bd   :  { %493 = vst.msk [vmem:[#allocation2 + $0x30] sm:$0xff] %vm486_vm1, %v786_v37 }
 0x2be   :  { %798 = shalt.err (!%p795_p4)
}
 0x2bf   :  { %s799_s15 = scalar_lea.hbm %s1024_s7, 1024 }
 0x2c0   :  { %p800_p5 = scmp.ne.s32.totalorder %s1024_s7, %s799_s15  ;;  %p803_p6 = scmp.lt.u32.totalorder %s799_s15, %s1024_s7 }
 0x2c2   :  { %p805_p7 = pnand %p803_p6, %p800_p5 }
 0x2c4   :  { %808 = shalt.err (!%p805_p7)
}
 0x2c5   :  { %s812_s20 = smov 128   ;;  %s813_s21 = smov 8  }
 0x2c6   :  { %506 = dma.vmem_to_hbm [thread:$0]  %s501_s1, 1024, %s1024_s7, [#allocation3], %s812_s20, %s812_s20, %s813_s21  }
 0x2c7   :  { %809 = dma.done.wait [#allocation3], 1024  }
 0x2c8   :  { %810 = vsyncadd [#allocation3], 4294966272 }
 0x2c9   :  { %510 = vsyncpa [#allocation3], 1 }

</bundles_post_ra>
